<compile_context>
chip_gen: v7x
topology: tpu7x:2x2x1
jax: 0.10.0
libtpu: 0.0.40
codegen_flags: <defaults>
</compile_context>

<pallas_src>
import functools

import jax
import jax.numpy as jnp
from jax.experimental import pallas as pl
from jax.experimental.pallas import tpu as pltpu


HIDDEN = 64        # logical hidden width of the module
HIDDEN_PAD = 128   # lane-padded hidden width (padded once at init; mathematically transparent)


# ----------------------------- Pallas kernel --------------------------------

def tumor_classifier_kernel(x_ref, w1_ref, b1_ref, w2_ref, b2_ref, out_ref):
    f32 = jnp.float32
    # Layer 1: relu(x @ W1 + b1) — MXU matmul with f32 accumulator, bias+ReLU on VPU.
    h = jnp.maximum(
        jnp.dot(x_ref[...], w1_ref[...], preferred_element_type=f32) + b1_ref[...],
        0.0)
    # Layer 2: h @ W2 + b2 — zero-padded hidden rows of W2 contribute exactly 0.
    out_ref[...] = (jnp.dot(h, w2_ref[...], preferred_element_type=f32)
                    + b2_ref[...]).astype(out_ref.dtype)


# ------------------------------ Parameters ----------------------------------

def init_params(key, in_dim=32, num_classes=3, hidden=HIDDEN, hidden_pad=HIDDEN_PAD):
    """PyTorch-like nn.Linear init (uniform(-1/sqrt(fan_in))); weights stored transposed
    and hidden-dim padding applied ONCE here (hoisted out of the forward pass)."""
    ks = jax.random.split(key, 4)
    f32 = jnp.float32

    def u(k, shape, fan_in):
        bound = 1.0 / jnp.sqrt(jnp.asarray(fan_in, f32))
        return jax.random.uniform(k, shape, f32, -bound, bound)

    w1 = u(ks[0], (in_dim, hidden), in_dim)        # Linear(in_dim, 64).weight.T
    b1 = u(ks[1], (1, hidden), in_dim)             # Linear(in_dim, 64).bias
    w2 = u(ks[2], (hidden, num_classes), hidden)   # Linear(64, num_classes).weight.T
    b2 = u(ks[3], (1, num_classes), hidden)        # Linear(64, num_classes).bias

    hp = hidden_pad - hidden
    return {
        "w1": jnp.pad(w1, ((0, 0), (0, hp))),      # (in_dim, 128)  zero cols 64..127
        "b1": jnp.pad(b1, ((0, 0), (0, hp))),      # (1, 128)
        "w2": jnp.pad(w2, ((0, hp), (0, 0))),      # (128, num_classes) zero rows 64..127
        "b2": b2,                                  # (1, num_classes)
    }


# ------------------------------ Forward pass ----------------------------------

@functools.partial(jax.jit, static_argnames=("block_b",))
def tumor_classifier_forward(params, x, block_b=512):
    x = x.astype(jnp.float32)
    B, in_dim = x.shape
    hidden_pad = params["w1"].shape[1]
    num_classes = params["w2"].shape[1]

    # Single full-array block for small B; batch-tiled + pipelined grid for large B.
    tile_b = B if B <= block_b else block_b
    grid = (pl.cdiv(B, tile_b),)

    # Advisory cost estimate using the REAL (unpadded) problem size.
    flops = 2 * B * (in_dim * HIDDEN + HIDDEN * num_classes)
    bytes_accessed = 4 * (x.size + params["w1"].size + params["b1"].size
                          + params["w2"].size + params["b2"].size + B * num_classes)

    return pl.pallas_call(
        tumor_classifier_kernel,
        out_shape=jax.ShapeDtypeStruct((B, num_classes), jnp.float32),
        grid=grid,
        in_specs=[
            pl.BlockSpec((tile_b, in_dim), lambda i: (i, 0)),          # x: batch-tiled
            pl.BlockSpec((in_dim, hidden_pad), lambda i: (0, 0)),      # W1: VMEM-resident
            pl.BlockSpec((1, hidden_pad), lambda i: (0, 0)),           # b1: VMEM-resident
            pl.BlockSpec((hidden_pad, num_classes), lambda i: (0, 0)), # W2: VMEM-resident
            pl.BlockSpec((1, num_classes), lambda i: (0, 0)),          # b2: VMEM-resident
        ],
        out_specs=pl.BlockSpec((tile_b, num_classes), lambda i: (i, 0)),
        compiler_params=pltpu.CompilerParams(
            dimension_semantics=("parallel",)),
        cost_estimate=pl.CostEstimate(
            flops=flops, transcendentals=0, bytes_accessed=bytes_accessed),
    )(x, params["w1"], params["b1"], params["w2"], params["b2"])


# --------------------------- Pure-JAX reference -------------------------------

def tumor_classifier_reference(params, x):
    # Padding is mathematically transparent: zero W1 columns -> relu -> 0,
    # which hit zero W2 rows -> contribute 0.
    h = jnp.maximum(x @ params["w1"] + params["b1"], 0.0)
    return h @ params["w2"] + params["b2"]


# ----------------------------------- main -------------------------------------

if __name__ == "__main__":
    B, in_dim, num_classes = 2, 32, 3

    key = jax.random.PRNGKey(0)
    k_params, k_x = jax.random.split(key, 2)

    params = init_params(k_params, in_dim=in_dim, num_classes=num_classes)
    x = jax.random.normal(k_x, (B, in_dim), jnp.float32)

    out = tumor_classifier_forward(params, x)
    out = jax.block_until_ready(out)

    ref = tumor_classifier_reference(params, x)
    assert out.shape == (B, num_classes), out.shape
    assert jnp.allclose(out, ref, atol=1e-5, rtol=1e-5), (out, ref)

    print("KERNEL_OK")
</pallas_src>

<mosaic_0001>
module attributes {stable_mosaic.version = 11 : i64} {
  func.func @tumor_classifier_kernel(%arg0: i32, %arg1: memref<2x32xf32, #tpu.memory_space<vmem>>, %arg2: memref<32x128xf32, #tpu.memory_space<vmem>>, %arg3: memref<1x128xf32, #tpu.memory_space<vmem>>, %arg4: memref<128x3xf32, #tpu.memory_space<vmem>>, %arg5: memref<1x3xf32, #tpu.memory_space<vmem>>, %arg6: memref<2x3xf32, #tpu.memory_space<vmem>>) attributes {dimension_semantics = [#tpu.dimension_semantics<parallel>], iteration_bounds = array<i64: 1>, scalar_prefetch = 0 : i64, scratch_operands = 0 : i64, tpu.core_type = #tpu.core_type<tc>, window_params = [{transform_indices = @transform_0, window_bounds = array<i64: 2, 32>}, {pipeline_mode = #tpu.pipeline_mode<synchronous>, transform_indices = @transform_1, window_bounds = array<i64: 32, 128>}, {pipeline_mode = #tpu.pipeline_mode<synchronous>, transform_indices = @transform_2, window_bounds = array<i64: 1, 128>}, {pipeline_mode = #tpu.pipeline_mode<synchronous>, transform_indices = @transform_3, window_bounds = array<i64: 128, 3>}, {pipeline_mode = #tpu.pipeline_mode<synchronous>, transform_indices = @transform_4, window_bounds = array<i64: 1, 3>}, {transform_indices = @transform_5, window_bounds = array<i64: 2, 3>}]} {
    %c0 = arith.constant 0 : index
    %c0_0 = arith.constant 0 : index
    %0 = vector.load %arg1[%c0, %c0_0] : memref<2x32xf32, #tpu.memory_space<vmem>>, vector<2x32xf32>
    %c0_1 = arith.constant 0 : index
    %c0_2 = arith.constant 0 : index
    %1 = vector.load %arg2[%c0_1, %c0_2] : memref<32x128xf32, #tpu.memory_space<vmem>>, vector<32x128xf32>
    %cst = arith.constant dense<0.000000e+00> : vector<2x128xf32>
    %2 = tpu.matmul %0, %1, %cst {dimension_numbers = #tpu.dot_dimension_numbers<[1], [0], [0], [1], [0, 0, 1, 1], [], []>} : vector<2x32xf32>, vector<32x128xf32>, vector<2x128xf32> -> vector<2x128xf32>
    %c0_3 = arith.constant 0 : index
    %c0_4 = arith.constant 0 : index
    %3 = vector.load %arg3[%c0_3, %c0_4] : memref<1x128xf32, #tpu.memory_space<vmem>>, vector<1x128xf32>
    %4 = vector.broadcast %3 : vector<1x128xf32> to vector<2x128xf32>
    %5 = arith.addf %2, %4 : vector<2x128xf32>
    %cst_5 = arith.constant 0.000000e+00 : f32
    %6 = vector.broadcast %cst_5 : f32 to vector<2x128xf32>
    %7 = arith.maximumf %5, %6 : vector<2x128xf32>
    %c0_6 = arith.constant 0 : index
    %c0_7 = arith.constant 0 : index
    %8 = vector.load %arg4[%c0_6, %c0_7] : memref<128x3xf32, #tpu.memory_space<vmem>>, vector<128x3xf32>
    %cst_8 = arith.constant dense<0.000000e+00> : vector<2x3xf32>
    %9 = tpu.matmul %7, %8, %cst_8 {dimension_numbers = #tpu.dot_dimension_numbers<[1], [0], [0], [1], [0, 0, 1, 1], [], []>} : vector<2x128xf32>, vector<128x3xf32>, vector<2x3xf32> -> vector<2x3xf32>
    %c0_9 = arith.constant 0 : index
    %c0_10 = arith.constant 0 : index
    %10 = vector.load %arg5[%c0_9, %c0_10] : memref<1x3xf32, #tpu.memory_space<vmem>>, vector<1x3xf32>
    %11 = vector.broadcast %10 : vector<1x3xf32> to vector<2x3xf32>
    %12 = arith.addf %9, %11 : vector<2x3xf32>
    %c0_11 = arith.constant 0 : index
    %c0_12 = arith.constant 0 : index
    %13 = vector.load %arg6[%c0_11, %c0_12] : memref<2x3xf32, #tpu.memory_space<vmem>>, vector<2x3xf32>
    tpu.vector_store %arg6[%c0_11, %c0_12], %12 {strides = array<i32>} : memref<2x3xf32, #tpu.memory_space<vmem>>, vector<2x3xf32>,
    return
  }
  func.func @transform_0(%arg0: i32) -> (i32, i32) {
    %c0_i32 = arith.constant 0 : i32
    %c0_i32_0 = arith.constant 0 : i32
    return %arg0, %c0_i32 : i32, i32
  }
  func.func @transform_1(%arg0: i32) -> (i32, i32) {
    %c0_i32 = arith.constant 0 : i32
    %c0_i32_0 = arith.constant 0 : i32
    %c0_i32_1 = arith.constant 0 : i32
    return %c0_i32, %c0_i32_0 : i32, i32
  }
  func.func @transform_2(%arg0: i32) -> (i32, i32) {
    %c0_i32 = arith.constant 0 : i32
    %c0_i32_0 = arith.constant 0 : i32
    %c0_i32_1 = arith.constant 0 : i32
    return %c0_i32, %c0_i32_0 : i32, i32
  }
  func.func @transform_3(%arg0: i32) -> (i32, i32) {
    %c0_i32 = arith.constant 0 : i32
    %c0_i32_0 = arith.constant 0 : i32
    %c0_i32_1 = arith.constant 0 : i32
    return %c0_i32, %c0_i32_0 : i32, i32
  }
  func.func @transform_4(%arg0: i32) -> (i32, i32) {
    %c0_i32 = arith.constant 0 : i32
    %c0_i32_0 = arith.constant 0 : i32
    %c0_i32_1 = arith.constant 0 : i32
    return %c0_i32, %c0_i32_0 : i32, i32
  }
  func.func @transform_5(%arg0: i32) -> (i32, i32) {
    %c0_i32 = arith.constant 0 : i32
    %c0_i32_0 = arith.constant 0 : i32
    return %arg0, %c0_i32 : i32, i32
  }
}

</mosaic_0001>

<bundles_post_ra>
// kernel: tumor_classifier_forward.1
= control target key start
LH: loop header
LB: loop body
LE: loop exit
PB: predicated region body
PF: predicated region fallthrough
CT: control target
= control target key end

     0   :  { %v346_v3 = vmov 0.0|0.0   ;;  %vm347_vm0 = vmmov 0   ;;  %v348_v6 = vmov 0.0   ;;  %s461_s0 = inlined_call_operand.vmem [shape: f32[2,32], index: 0, kind: input, shape index: {}]   ;;  %s462_s1 = inlined_call_operand.vmem [shape: f32[32,128], index: 1, kind: input, shape index: {}]   ;;  %s463_s2 = inlined_call_operand.vmem [shape: f32[1,128], index: 2, kind: input, shape index: {}]   ;;  %s464_s3 = inlined_call_operand.vmem [shape: f32[128,3], index: 3, kind: input, shape index: {}]   ;;  %s465_s4 = inlined_call_operand.vmem [shape: f32[1,3], index: 4, kind: input, shape index: {}]   ;;  %s466_s5 = inlined_call_operand.hbm [shape: f32[2,3], index: 5, kind: output, shape index: {}]  }
   0x1   :  { %v22_v0 = vld [vmem:[%s462_s1] sm:$0xff]  ;;  %v23_v1 = vld [vmem:[%s462_s1 + $0x8] sm:$0xff]  ;;  %v24_v2 = vld [vmem:[%s462_s1 + $0x10] sm:$0xff]  ;;  %288 = vmatprep.subr.bf16.mxu0 %v346_v3  ;;  %250 = vmatprep.mubr.msk.f32.mxu0 %vm347_vm0, %v348_v6 }
   0x2   :  { %v289_v4 = vpack.c.bf16 %v23_v1, %v22_v0  ;;  %v25_v5 = vld [vmem:[%s462_s1 + $0x18] sm:$0xff]  ;;  %v108_v7 = vld [vmem:[%s464_s3] sm:$0xff]  ;;  %294 = vmatprep.subr.bf16.mxu1 %v346_v3  ;;  %v109_v8 = vld [vmem:[%s464_s3 + $0x8] sm:$0xff]  ;;  %285 = vmatprep.mubr.msk.f32.mxu1 %vm347_vm0, %v348_v6 }
   0x3   :  { %v110_v9 = vld [vmem:[%s464_s3 + $0x10] sm:$0xff]  ;;  %v111_v10 = vld [vmem:[%s464_s3 + $0x18] sm:$0xff]  ;;  %v292_v11 = vpack.c.bf16 %v25_v5, %v24_v2  ;;  %v295_v12 = vpack.c.bf16 %v109_v8, %v108_v7  ;;  %v112_v14 = vld [vmem:[%s464_s3 + $0x20] sm:$0xff] }
   0x4   :  { %290 = vmatpush3.bf16.msra.mxu0 %v289_v4  ;;  %v298_v13 = vpack.c.bf16 %v111_v10, %v110_v9  ;;  %v113_v15 = vld [vmem:[%s464_s3 + $0x28] sm:$0xff] }
   0x5   :  { %291 = vmatprep.subr.bf16.mxu0 %v346_v3  ;;  %296 = vmatpush3.bf16.msra.mxu1 %v295_v12 }
   0x6   :  { %297 = vmatprep.subr.bf16.mxu1 %v346_v3 }
   0x7   :  { %10 = vsyncpa [#allocation3], 0  ;;  %v21_v16 = vld [vmem:[%s461_s0] sm:$0x3]  ;;  %vm33_vm1 = vcmask 261120   ;;  %v301_v17 = vpack.c.bf16 %v113_v15, %v112_v14  ;;  %v114_v18 = vld [vmem:[%s464_s3 + $0x30] sm:$0xff] }
   0x8   :  { %293 = vmatpush3.bf16.msra.mxu0 %v292_v11  ;;  %v115_v19 = vld [vmem:[%s464_s3 + $0x38] sm:$0xff]  ;;  %v116_v21 = vld [vmem:[%s464_s3 + $0x40] sm:$0xff]  ;;  %v117_v22 = vld [vmem:[%s464_s3 + $0x48] sm:$0xff]  ;;  %s349_s11 = smov [#allocation2]   ;;  %vm201_vm2 = vcmask 17408  }
   0x9   :  { %299 = vmatpush3.bf16.msra.mxu1 %v298_v13  ;;  %v304_v20 = vpack.c.bf16 %v115_v19, %v114_v18  ;;  %v307_v23 = vpack.c.bf16 %v117_v22, %v116_v21  ;;  %v118_v24 = vld [vmem:[%s464_s3 + $0x50] sm:$0xff]  ;;  %v119_v25 = vld [vmem:[%s464_s3 + $0x58] sm:$0xff]  ;;  %v120_v27 = vld [vmem:[%s464_s3 + $0x60] sm:$0xff]  ;;  %s209_s12 = sshll.u32 %s349_s11, 4  ;;  %s210_s12 = int_to_ptr.vmem [resolvable:$true] %s209_s12 }
   0xa   :  { %300 = vmatprep.subr.bf16.mxu1 %v346_v3  ;;  %v310_v26 = vpack.c.bf16 %v119_v25, %v118_v24  ;;  %v121_v28 = vld [vmem:[%s464_s3 + $0x68] sm:$0xff]  ;;  %v122_v30 = vld [vmem:[%s464_s3 + $0x70] sm:$0xff]  ;;  %v123_v31 = vld [vmem:[%s464_s3 + $0x78] sm:$0xff]  ;;  %s322_s3 = scalar_lea.vmem %s210_s12, 32  ;;  %p327_p1 = scmp.lt.s32.totalorder %s210_s12, %s210_s12 }
   0xb   :  { %251 = vmatmul.mubr.msk.f32.vlgmr.msra.gmra.mrb[0].mxu0 %vm33_vm1, %v21_v16  ;;  %v313_v29 = vpack.c.bf16 %v121_v28, %v120_v27  ;;  %v316_v32 = vpack.c.bf16 %v123_v31, %v122_v30  ;;  %v217_v33 = vld [vmem:[%s463_s2] ss:$0 sm:$0xff]  ;;  %p323_p0 = scmp.ne.s32.totalorder %s210_s12, %s322_s3  ;;  %p328_p2 = scmp.lt.s32.totalorder %s322_s3, %s322_s3 }
   0xc   :  { %v219_v38 = vld [vmem:[%s465_s4] ss:$0 sm:$0xff] }
   0xd   :  { %302 = vmatpush3.bf16.msra.mxu1 %v301_v17  ;;  %p329_p3 = por %p328_p2, %p327_p1 }
   0xe   :  { %303 = vmatprep.subr.bf16.mxu1 %v346_v3 }
   0xf   :  { %p330_p4 = pnand %p329_p3, %p323_p0 }
  0x11   :  { %305 = vmatpush3.bf16.msra.mxu1 %v304_v20 }
  0x12   :  { %306 = vmatprep.subr.bf16.mxu1 %v346_v3 }
  0x15   :  { %308 = vmatpush3.bf16.msra.mxu1 %v307_v23 }
  0x16   :  { %309 = vmatprep.subr.bf16.mxu1 %v346_v3 }
  0x19   :  { %311 = vmatpush3.bf16.msra.mxu1 %v310_v26 }
  0x1a   :  { %312 = vmatprep.subr.bf16.mxu1 %v346_v3 }
  0x1d   :  { %314 = vmatpush3.bf16.msra.mxu1 %v313_v29 }
  0x1e   :  { %315 = vmatprep.subr.bf16.mxu1 %v346_v3 }
  0x21   :  { %317 = vmatpush3.bf16.msra.mxu1 %v316_v32 }
  0xde   :  { %v103_v34 = vpop.f32.mrb[0].mxu0 }
  0xdf   :  { %v104_v35 = vadd.f32 %v217_v33, %v103_v34  ;;  %v252_v36 = vpop.f32.mrb[1].mxu0 }
  0xe1   :  { %v107_v37 = vmax.f32 %v104_v35, 0.0 }
  0xe3   :  { %286 = vmatmul.mubr.f32.vlgmr.msra.gmra.mrb[0].mxu1 %v107_v37 }
 0x1b6   :  { %v197_v39 = vpop.f32.mrb[0].mxu1 }
 0x1b7   :  { %v198_v40 = vadd.f32 %v219_v38, %v197_v39  ;;  %v287_v41 = vpop.f32.mrb[1].mxu1 }
 0x1b9   :  { %202 = vst.msk [vmem:[#allocation2] sm:$0x3] %vm201_vm2, %v198_v40 }
 0x1ba   :  { %333 = shalt.err (!%p330_p4)
}
 0x1bb   :  { %s334_s14 = scalar_lea.hbm %s466_s5, 32 }
 0x1bc   :  { %p335_p5 = scmp.ne.s32.totalorder %s466_s5, %s334_s14  ;;  %p338_p6 = scmp.lt.u32.totalorder %s334_s14, %s466_s5 }
 0x1be   :  { %p340_p7 = pnand %p338_p6, %p335_p5 }
 0x1c0   :  { %343 = shalt.err (!%p340_p7)
}
 0x1c1   :  { %212 = dma.vmem_to_hbm [thread:$0]  %s210_s12, 32, %s466_s5, [#allocation3]  }
 0x1c2   :  { %344 = dma.done.wait [#allocation3], 32  }
 0x1c3   :  { %345 = vsyncadd [#allocation3], 4294967264 }
 0x1c4   :  { %216 = vsyncpa [#allocation3], 1 }

</bundles_post_ra>
